<compile_context>
chip_gen: v7x
topology: tpu7x:2x2x1
jax: 0.10.0
libtpu: 0.0.40
codegen_flags: <defaults>
</compile_context>

<pallas_src>
import functools
import math

import jax
import jax.numpy as jnp
from jax.experimental import pallas as pl
from jax.experimental.pallas import tpu as pltpu


_LANE = 128
_MAX_SLAB_WIDTH = 32 * _LANE            # 4096-lane-wide slabs
_MIN_SPLIT_BYTES = 2 * 1024 * 1024      # below this, one block is fine


def _round_up(x, m):
    return ((x + m - 1) // m) * m


def _cdiv(a, b):
    return -(-a // b)


def _sublane_multiple(dtype):
    """Packed sublane tile: 8 rows for 32-bit, 16 for bf16/f16, 32 for int8/fp8."""
    itemsize = jnp.dtype(dtype).itemsize
    return max(8, 32 // max(1, itemsize))


@functools.lru_cache(maxsize=None)
def _generation_params():
    """(block_budget_bytes, vmem_limit_bytes, num_tensorcores), generation-aware."""
    vmem_bytes = 64 * 1024 * 1024       # conservative default: v7x physical VMEM
    num_cores = 2                       # conservative default: up to 2 TCs/chip
    try:
        info = pltpu.get_tpu_info()
    except Exception:
        info = None
    if info is not None:
        try:
            v = int(getattr(info, "vmem_capacity_bytes", 0) or 0)
            if v > 0:
                vmem_bytes = v
        except Exception:
            pass
        for name in ("num_cores", "core_count", "num_tensorcores"):
            try:
                c = int(getattr(info, name, 0) or 0)
            except Exception:
                c = 0
            if c > 0:
                num_cores = c
                break
    if vmem_bytes >= 96 * 1024 * 1024:      # v5e / v6e: 128 MiB physical VMEM
        block_budget = 16 * 1024 * 1024     # 2x(in+out) buffers = 64 MiB working set
        vmem_limit = 96 * 1024 * 1024
    else:                                    # v7x (64 MiB VMEM) or unknown
        block_budget = 8 * 1024 * 1024      # 32 MiB working set
        vmem_limit = 48 * 1024 * 1024
    return block_budget, vmem_limit, max(1, num_cores)


# ---------------------------------------------------------------------------
# Pallas kernel: identity / pass-through of one VMEM block.
# This is the entire concrete tensor semantics of BaseModel.
# ---------------------------------------------------------------------------
def _passthrough_kernel(x_ref, o_ref):
    o_ref[...] = x_ref[...]


def _passthrough_2d(x2d):
    """Identity copy of a 2-D slab.  No pad/slice passes: ragged last blocks are
    masked by Pallas; an unaligned last dim uses a full-width block."""
    block_budget, vmem_limit, num_cores = _generation_params()
    R, C = x2d.shape
    dtype = x2d.dtype
    itemsize = jnp.dtype(dtype).itemsize
    sub = _sublane_multiple(dtype)

    # Column tiling: full array width when a sub-row slab of it fits the budget
    # (legal for ANY C); otherwise split into 128-multiple column blocks
    # (ragged last column block is masked).  cols_cand already accounts for the
    # minimum sublane padding (sub rows) of the VMEM tile.
    cols_cand = max(_LANE, (block_budget // (sub * itemsize)) // _LANE * _LANE)
    tile_cols = C if cols_cand >= C else cols_cand
    cols_pad = _round_up(tile_cols, _LANE)   # VMEM footprint of the lane dim

    # Row tiling: as big as the budget allows, but capped so large slabs get
    # >= 2*num_cores row blocks (DMA overlap + multi-TC sharding on v7x).
    max_rows_budget = max(sub, (block_budget // (cols_pad * itemsize)) // sub * sub)
    slab_bytes = R * C * itemsize
    if slab_bytes >= _MIN_SPLIT_BYTES:
        rows_cap = max(sub, _round_up(_cdiv(R, 2 * num_cores), sub))
    else:
        rows_cap = _round_up(max(R, 1), sub)
    cand = min(max_rows_budget, rows_cap)
    tile_rows = R if cand >= R else cand     # == R (full dim) when one block covers it

    grid_rows = _cdiv(R, tile_rows)
    grid_cols = _cdiv(C, tile_cols)

    if grid_cols == 1:
        grid = (grid_rows,)
        in_spec = pl.BlockSpec((tile_rows, tile_cols), lambda i: (i, 0))
        out_spec = pl.BlockSpec((tile_rows, tile_cols), lambda i: (i, 0))
        dims = ("parallel",)
    else:
        grid = (grid_rows, grid_cols)
        in_spec = pl.BlockSpec((tile_rows, tile_cols), lambda i, j: (i, j))
        out_spec = pl.BlockSpec((tile_rows, tile_cols), lambda i, j: (i, j))
        dims = ("parallel", "parallel")

    # No input_output_aliases: for a non-donated input XLA would insert a
    # defensive copy (an extra full HBM pass), which is strictly worse than
    # writing a fresh output buffer.
    return pl.pallas_call(
        _passthrough_kernel,
        out_shape=jax.ShapeDtypeStruct((R, C), dtype),
        grid=grid,
        in_specs=[in_spec],
        out_specs=out_spec,
        compiler_params=pltpu.CompilerParams(
            dimension_semantics=dims,
            vmem_limit_bytes=vmem_limit,
        ),
        cost_estimate=pl.CostEstimate(
            flops=0, transcendentals=0, bytes_accessed=2 * R * C * itemsize),
    )(x2d)


def _lane_dense_width(n_elems):
    """Largest multiple of 128 that divides n_elems, capped at _MAX_SLAB_WIDTH."""
    if n_elems % _LANE != 0:
        return None
    m = n_elems // _LANE
    k = min(m, _MAX_SLAB_WIDTH // _LANE)
    while k > 1 and m % k != 0:
        k -= 1
    return _LANE * k


def _passthrough_impl(x):
    shape = x.shape
    n = math.prod(shape) if shape else 1
    if n == 0:
        return x
    w = _lane_dense_width(n)
    if w is not None:
        # Lane-dense slab: wide multiple-of-128 rows, zero padding anywhere.
        x2d = x.reshape(n // w, w)
    elif x.ndim >= 2:
        # Unaligned element count: merge trailing dims into the widest last dim
        # that stays <= _MAX_SLAB_WIDTH; full-width blocks make any C legal.
        c = shape[-1]
        split = x.ndim - 1
        while split > 1 and c * shape[split - 1] <= _MAX_SLAB_WIDTH:
            split -= 1
            c *= shape[split]
        x2d = x.reshape(-1, c)
    else:
        x2d = x.reshape(1, n)
    y2d = _passthrough_2d(x2d)
    return y2d.reshape(shape)


# JIT per shape/dtype: fuses the reshapes around the custom call and removes
# per-op eager dispatch overhead (dominant for small tensors).
_passthrough = jax.jit(_passthrough_impl)


# ---------------------------------------------------------------------------
# JAX-side BaseModel mirroring the PyTorch class contract.
# ---------------------------------------------------------------------------
class BaseModel:
    def __init__(self, **kwargs):
        # Same as the PyTorch __init__: store every kwarg as an attribute.
        for name, value in kwargs.items():
            setattr(self, name, value)

    def forward(self, **input_data):
        """`input_data` must contain `phase` (mirrors the PyTorch docstring).

        The PyTorch base class raises NotImplementedError; the only defined
        behaviour is "base class adds no compute".  By default tensors are
        returned untouched (zero HBM traffic).  With `use_pallas_identity=True`
        every tensor runs through the Pallas identity kernel (the on-device
        template subclasses extend with real compute).
        """
        assert "phase" in input_data, "input_data must contain `phase`"
        run_kernel = bool(getattr(self, "use_pallas_identity", False))
        outputs = {"phase": input_data["phase"]}
        for name, value in input_data.items():
            if name == "phase":
                continue
            value = jnp.asarray(value)
            outputs[name] = _passthrough(value) if run_kernel else value
        return outputs

    # ------ abstract / host-side methods: no Pallas equivalent -------------
    def get_metrics(self, phase, predictions, dataset):
        # TODO(synk): abstract in the PyTorch source (subclass-specific metrics).
        raise NotImplementedError

    def get_predictions(self, forward_output, forward_target, dataset,
                        batch_start_index=0):
        # TODO(synk): abstract in the PyTorch source (subclass-specific decode).
        raise NotImplementedError

    def save_predictions(self, predictions, file_path):
        # TODO(synk): host-side JSON write (write_json) — not a kernel op.
        raise NotImplementedError

    def save(self, save_path, only_save_model_weight=False):
        # TODO(synk): torch.save checkpointing — not a kernel op.
        raise NotImplementedError


if __name__ == "__main__":
    key = jax.random.PRNGKey(0)
    k0, k1, k2, k3 = jax.random.split(key, 4)

    # kwargs -> attributes; enable the Pallas identity path for the demo.
    model = BaseModel(name="base_model_demo", hidden=32, use_pallas_identity=True)

    # Aligned NCHW input: flattens to a lane-dense 2048-wide slab, no padding.
    x = jax.random.normal(k0, (2, 4, 16, 16), dtype=jnp.float32)
    # Unaligned NCHW (14x14): element count not lane-aligned -> full-width block,
    # no padding and no output slicing.
    x14 = jax.random.normal(k1, (1, 3, 14, 14), dtype=jnp.float32)
    # bf16 input: exercises dtype-aware (16-row) sublane tiling.
    xb = jax.random.normal(k2, (2, 4, 16, 16)).astype(jnp.bfloat16)
    # Larger slab: multi-block row grid with a ragged (masked) last block.
    xbig = jax.random.normal(k3, (1, 1, 520, 1024), dtype=jnp.float32)

    out = model.forward(phase="eval", x=x, x14=x14, xb=xb, xbig=xbig)
    y = jax.block_until_ready(out["x"])
    y14 = jax.block_until_ready(out["x14"])
    yb = jax.block_until_ready(out["xb"])
    ybig = jax.block_until_ready(out["xbig"])

    assert y.shape == x.shape and y.dtype == x.dtype
    assert y14.shape == x14.shape and y14.dtype == x14.dtype
    assert yb.shape == xb.shape and yb.dtype == xb.dtype
    assert ybig.shape == xbig.shape and ybig.dtype == xbig.dtype
    assert bool(jnp.array_equal(y, x))
    assert bool(jnp.array_equal(y14, x14))
    assert bool(jnp.array_equal(yb, xb))
    assert bool(jnp.array_equal(ybig, xbig))

    # Default path: base class adds no compute -> pure pass-through, no kernel.
    plain = BaseModel()
    out2 = plain.forward(phase="train", x=x)
    assert bool(jnp.array_equal(out2["x"], x))

    print("KERNEL_OK")
</pallas_src>

<mosaic_0001>
module attributes {stable_mosaic.version = 11 : i64} {
  func.func @_passthrough_kernel(%arg0: i32, %arg1: memref<1x2048xf32, #tpu.memory_space<vmem>>, %arg2: memref<1x2048xf32, #tpu.memory_space<vmem>>) attributes {dimension_semantics = [#tpu.dimension_semantics<parallel>], iteration_bounds = array<i64: 1>, scalar_prefetch = 0 : i64, scratch_operands = 0 : i64, tpu.core_type = #tpu.core_type<tc>, window_params = [{transform_indices = @transform_0, window_bounds = array<i64: 1, 2048>}, {transform_indices = @transform_1, window_bounds = array<i64: 1, 2048>}]} {
    %c0 = arith.constant 0 : index
    %c0_0 = arith.constant 0 : index
    %0 = vector.load %arg1[%c0, %c0_0] : memref<1x2048xf32, #tpu.memory_space<vmem>>, vector<1x2048xf32>
    %c0_1 = arith.constant 0 : index
    %c0_2 = arith.constant 0 : index
    %1 = vector.load %arg2[%c0_1, %c0_2] : memref<1x2048xf32, #tpu.memory_space<vmem>>, vector<1x2048xf32>
    tpu.vector_store %arg2[%c0_1, %c0_2], %0 {strides = array<i32>} : memref<1x2048xf32, #tpu.memory_space<vmem>>, vector<1x2048xf32>,
    return
  }
  func.func @transform_0(%arg0: i32) -> (i32, i32) {
    %c0_i32 = arith.constant 0 : i32
    %c0_i32_0 = arith.constant 0 : i32
    return %arg0, %c0_i32 : i32, i32
  }
  func.func @transform_1(%arg0: i32) -> (i32, i32) {
    %c0_i32 = arith.constant 0 : i32
    %c0_i32_0 = arith.constant 0 : i32
    return %arg0, %c0_i32 : i32, i32
  }
}

</mosaic_0001>

<bundles_post_ra>
// kernel: _passthrough_impl.1
= control target key start
LH: loop header
LB: loop body
LE: loop exit
PB: predicated region body
PF: predicated region fallthrough
CT: control target
= control target key end

     0   :  { %s38_s0 = inlined_call_operand.vmem [shape: f32[1,2048], index: 0, kind: input, shape index: {}]   ;;  %s39_s1 = inlined_call_operand.vmem [shape: f32[1,2048], index: 1, kind: output, shape index: {}]  }
   0x1   :  { %v8_v0 = vld [vmem:[%s38_s0] sm:$0xff]  ;;  %v9_v1 = vld [vmem:[%s38_s0 + $0x8] sm:$0xff] }
   0x2   :  { %10 = vst [vmem:[%s39_s1] sm:$0xff] %v8_v0  ;;  %11 = vst [vmem:[%s39_s1 + $0x8] sm:$0xff] %v9_v1 }

</bundles_post_ra>
